<compile_context>
chip_gen: v5e
topology: v5e:2x2
jax: 0.10.0
libtpu: 0.0.40
codegen_flags: <defaults>
</compile_context>

<pallas_src>
import math

import jax
import jax.numpy as jnp
from jax import lax
from jax.experimental import pallas as pl
from jax.experimental.pallas import tpu as pltpu


# ------------------------------ Pallas kernel ------------------------------ #
def _coordconv_mm_kernel(x_ref, w_ref, b_ref, o_ref):
    # x_ref: (K*K*Cin, Npad)  bf16 im2col columns (batch*spatial along lanes)
    # w_ref: (Cout,   K*K*Cin) bf16 flattened feature weight
    # b_ref: (Cout,   Npad)   f32 folded coord-channel contribution + conv bias
    # o_ref: (Cout,   Npad)   lane-dense f32 output
    acc = jnp.dot(w_ref[...], x_ref[...], preferred_element_type=jnp.float32)
    o_ref[...] = (acc + b_ref[...]).astype(o_ref.dtype)


# ------------------------------ XLA-side helpers --------------------------- #
def _round_up(n, m):
    return ((n + m - 1) // m) * m


def _coord_image(H, W, dtype):
    # torch AddCoords: xx varies along width, yy along height, in [-1, 1].
    # (max(.,1) guards the degenerate 1-wide/1-tall case where torch would NaN.)
    xx = (jnp.arange(W, dtype=dtype) / max(W - 1, 1)) * 2.0 - 1.0
    yy = (jnp.arange(H, dtype=dtype) / max(H - 1, 1)) * 2.0 - 1.0
    xx_m = jnp.broadcast_to(xx[None, :], (H, W))
    yy_m = jnp.broadcast_to(yy[:, None], (H, W))
    return jnp.stack([xx_m, yy_m], axis=-1)[None]          # (1, H, W, 2)


def _coord_bias_map(weight, bias, cin, H, W, stride, padding):
    """(Cout, Ho, Wo) = conv(coord_image, weight[:, cin:cin+2]) + bias.

    Exact f32/HIGHEST XLA math, computed once per layer; this removes the coord
    channels (and the scalar bias broadcast) from the Pallas matmul entirely."""
    coords = _coord_image(H, W, weight.dtype)                       # (1, H, W, 2)
    w_coord = jnp.transpose(weight[:, cin:cin + 2], (2, 3, 1, 0))   # HWIO
    out = lax.conv_general_dilated(
        coords, w_coord, (stride, stride), [(padding, padding)] * 2,
        dimension_numbers=("NHWC", "HWIO", "NHWC"),
        precision=lax.Precision.HIGHEST)                            # (1, Ho, Wo, Cout)
    out = out[0] + bias[None, None, :]
    return jnp.transpose(out, (2, 0, 1))                            # (Cout, Ho, Wo)


def _fold_network(layers, cin, H, W):
    """Collapse the (1- or 2-layer, purely linear) CoordConv stack into one
    effective feature conv (Cout, Cin, Ke, Ke) plus a position-dependent bias
    map (Cout, Ho, Wo)."""
    w1, b1, k1, s1, p1 = layers[0]
    w1f = w1[:, :cin]                                               # feature part
    c1 = _coord_bias_map(w1, b1, cin, H, W, s1, p1)                 # (C1out, H1o, W1o)
    H1o = (H + 2 * p1 - k1) // s1 + 1
    W1o = (W + 2 * p1 - k1) // s1 + 1
    if len(layers) == 1:
        return w1f, c1, k1, s1, p1

    # Two stacked CoordConvs with no nonlinearity (num == 10): compose into one conv.
    w2, b2, k2, s2, p2 = layers[1]
    assert s1 == 1 and p1 == 0 and s2 == 1 and p2 == 0, "fusion assumes s=1, p=0"
    cmid = w1.shape[0]
    w2f = w2[:, :cmid]                                              # (Cout, cmid, k2, k2)
    ke = k1 + k2 - 1
    weff = jnp.zeros((w2.shape[0], cin, ke, ke), w1.dtype)
    for r in range(k2):
        for s in range(k2):
            weff = weff.at[:, :, r:r + k1, s:s + k1].add(
                jnp.einsum("nm,mcpq->ncpq", w2f[:, :, r, s], w1f,
                           precision=lax.Precision.HIGHEST))
    # Position-dependent bias: layer-2 feature conv applied to layer-1's
    # coord/bias map, plus layer-2's own coord/bias map.
    c2 = _coord_bias_map(w2, b2, cmid, H1o, W1o, s2, p2)            # (Cout, H2o, W2o)
    c1_img = jnp.transpose(c1, (1, 2, 0))[None]                     # (1, H1o, W1o, cmid)
    bmap = lax.conv_general_dilated(
        c1_img, jnp.transpose(w2f, (2, 3, 1, 0)), (1, 1), "VALID",
        dimension_numbers=("NHWC", "HWIO", "NHWC"),
        precision=lax.Precision.HIGHEST)[0]                         # (H2o, W2o, Cout)
    posbias = jnp.transpose(bmap, (2, 0, 1)) + c2
    return weff, posbias, ke, 1, 0


def _im2col(x_nhwc, kernel_size, stride, padding):
    """Feature-only im2col: (K*K*Cin, B*Ho*Wo), rows ordered (kh, kw, ci),
    columns ordered (b, ho, wo); batch/spatial stays the minor (lane) axis."""
    B, H, W, C = x_nhwc.shape
    K, s, p = kernel_size, stride, padding
    x_pad = jnp.pad(x_nhwc, ((0, 0), (p, p), (p, p), (0, 0)))
    Ho = (H + 2 * p - K) // s + 1
    Wo = (W + 2 * p - K) // s + 1
    rows = []
    for kh in range(K):
        for kw in range(K):
            patch = x_pad[:,
                          kh:kh + s * (Ho - 1) + 1:s,
                          kw:kw + s * (Wo - 1) + 1:s, :]            # (B, Ho, Wo, C)
            rows.append(jnp.moveaxis(patch, -1, 0).reshape(C, -1))
    return jnp.concatenate(rows, axis=0), Ho, Wo                    # (K*K*C, B*Ho*Wo)


# ------------------------------ Pallas wrapper ------------------------------ #
def coordconv_matmul_pallas(x_nhwc, w_feat, posbias, *, kernel_size, stride, padding):
    B = x_nhwc.shape[0]
    K = kernel_size
    Cout, Cin = w_feat.shape[0], w_feat.shape[1]

    X, Ho, Wo = _im2col(x_nhwc, K, stride, padding)
    KKC = K * K * Cin
    N = B * Ho * Wo
    Npad = max(_round_up(N, 128), 128)        # lane-dense output (unmasked vst)

    X = jnp.pad(X, ((0, 0), (0, Npad - N))).astype(jnp.bfloat16)
    W2 = jnp.transpose(w_feat, (0, 2, 3, 1)).reshape(Cout, KKC).astype(jnp.bfloat16)
    bias_cols = jnp.tile(posbias.reshape(Cout, Ho * Wo), (1, B))    # columns = (b,ho,wo)
    bias_cols = jnp.pad(bias_cols, ((0, 0), (0, Npad - N))).astype(jnp.float32)

    # Single grid step: whole problem (<~300 KB) fits trivially in VMEM on every
    # generation; splitting N only adds ~0.35 us/step of pipeline overhead.
    out_t = pl.pallas_call(
        _coordconv_mm_kernel,
        out_shape=jax.ShapeDtypeStruct((Cout, Npad), jnp.float32),
        grid=(1,),
        in_specs=[
            pl.BlockSpec((KKC, Npad), lambda i: (0, 0)),
            pl.BlockSpec((Cout, KKC), lambda i: (0, 0)),
            pl.BlockSpec((Cout, Npad), lambda i: (0, 0)),
        ],
        out_specs=pl.BlockSpec((Cout, Npad), lambda i: (0, 0)),
        compiler_params=pltpu.CompilerParams(dimension_semantics=("arbitrary",)),
    )(X, W2, bias_cols)

    # Only transpose in the whole forward: (Cout, B*HW) -> (B, HW, Cout).
    out = jnp.transpose(out_t[:, :N].reshape(Cout, B, Ho * Wo), (1, 2, 0))
    return out, Ho, Wo


# ------------------------------ MotionNet_Coord ----------------------------- #
class MotionNetCoordPallas:
    """Pallas equivalent of MotionNet_Coord (deterministic synthetic params)."""

    _CONFIGS = {
        8:  [("in", "out", 3, 2, 1)],
        10: [("in", 64, 5, 1, 0), (64, "out", 3, 1, 0)],
        12: [("in", "out", 5, 1, 0)],
        14: [("in", "out", 3, 1, 0)],
        16: [("in", "out", 3, 1, 1)],
    }

    def __init__(self, in_channel, out_channel, num, key):
        self.num = num
        self.in_channel = in_channel
        self.layers = []
        for (cin, cout, k, s, p) in self._CONFIGS[num]:
            cin = in_channel if cin == "in" else cin
            cout = out_channel if cout == "out" else cout
            key, wk, bk = jax.random.split(key, 3)
            fan_in = (cin + 2) * k * k
            bound = 1.0 / math.sqrt(fan_in)          # nn.Conv2d default init range
            w = jax.random.uniform(wk, (cout, cin + 2, k, k), jnp.float32, -bound, bound)
            b = jax.random.uniform(bk, (cout,), jnp.float32, -bound, bound)
            self.layers.append((w, b, k, s, p))

    def __call__(self, x):
        B, L, C = x.shape
        H = W = int(math.sqrt(L))
        # torch: x.transpose(1,2).view(B,C,H,W)  ==  NHWC reshape here
        x_nhwc = x.reshape(B, H, W, C)
        w_feat, posbias, K, s, p = _fold_network(self.layers, C, H, W)
        out, _, _ = coordconv_matmul_pallas(
            x_nhwc, w_feat, posbias, kernel_size=K, stride=s, padding=p)
        return out                                   # (B, Ho*Wo, Cout)


# -------------------------------- reference --------------------------------- #
def _reference(x, layers):
    B, L, C = x.shape
    H = W = int(math.sqrt(L))
    x_nhwc = x.reshape(B, H, W, C)
    for (w, b, k, s, p) in layers:
        Bc, Hc, Wc, Cc = x_nhwc.shape
        coords = jnp.broadcast_to(_coord_image(Hc, Wc, x.dtype), (Bc, Hc, Wc, 2))
        xc = jnp.concatenate([x_nhwc, coords], axis=-1)
        x_nhwc = lax.conv_general_dilated(
            xc, jnp.transpose(w, (2, 3, 1, 0)), (s, s), [(p, p), (p, p)],
            dimension_numbers=("NHWC", "HWIO", "NHWC"),
            precision=lax.Precision.HIGHEST) + b[None, None, None, :]
    B2, Ho, Wo, Co = x_nhwc.shape
    return x_nhwc.reshape(B2, Ho * Wo, Co)


# ---------------------------------- main ------------------------------------ #
if __name__ == "__main__":
    B, H, W, C_in, C_out = 2, 16, 16, 4, 8
    L = H * W

    key = jax.random.PRNGKey(0)
    key, xk = jax.random.split(key)
    x = jax.random.normal(xk, (B, L, C_in), dtype=jnp.float32)

    expected_hw = {8: 8, 10: 10, 16: 16}
    # num=16: k=3,s=1,p=1 (spatial preserved); num=8: k=3,s=2,p=1 (strided);
    # num=10: two fused CoordConvs (5x5 then 3x3) -> 10x10 output, tests N padding.
    for num in (16, 8, 10):
        key, pk = jax.random.split(key)
        model = MotionNetCoordPallas(C_in, C_out, num=num, key=pk)
        fwd = jax.jit(lambda inp, m=model: m(inp))
        out = jax.block_until_ready(fwd(x))
        ref = jax.block_until_ready(_reference(x, model.layers))
        ho = expected_hw[num]
        assert out.shape == (B, ho * ho, C_out), (num, out.shape)
        err = float(jnp.max(jnp.abs(out - ref)))
        assert jnp.allclose(out, ref, atol=3e-2, rtol=3e-2), (num, err)

    print("KERNEL_OK")
</pallas_src>

<mosaic_0001>
module attributes {stable_mosaic.version = 11 : i64} {
  func.func @_coordconv_mm_kernel(%arg0: i32, %arg1: memref<36x512xbf16, #tpu.memory_space<vmem>>, %arg2: memref<8x36xbf16, #tpu.memory_space<vmem>>, %arg3: memref<8x512xf32, #tpu.memory_space<vmem>>, %arg4: memref<8x512xf32, #tpu.memory_space<vmem>>) attributes {dimension_semantics = [#tpu.dimension_semantics<arbitrary>], iteration_bounds = array<i64: 1>, scalar_prefetch = 0 : i64, scratch_operands = 0 : i64, tpu.core_type = #tpu.core_type<tc>, window_params = [{pipeline_mode = #tpu.pipeline_mode<synchronous>, transform_indices = @transform_0, window_bounds = array<i64: 36, 512>}, {pipeline_mode = #tpu.pipeline_mode<synchronous>, transform_indices = @transform_1, window_bounds = array<i64: 8, 36>}, {pipeline_mode = #tpu.pipeline_mode<synchronous>, transform_indices = @transform_2, window_bounds = array<i64: 8, 512>}, {pipeline_mode = #tpu.pipeline_mode<synchronous>, transform_indices = @transform_3, window_bounds = array<i64: 8, 512>}]} {
    %c0 = arith.constant 0 : index
    %c0_0 = arith.constant 0 : index
    %0 = vector.load %arg2[%c0, %c0_0] : memref<8x36xbf16, #tpu.memory_space<vmem>>, vector<8x36xbf16>
    %c0_1 = arith.constant 0 : index
    %c0_2 = arith.constant 0 : index
    %1 = vector.load %arg1[%c0_1, %c0_2] : memref<36x512xbf16, #tpu.memory_space<vmem>>, vector<36x512xbf16>
    %cst = arith.constant dense<0.000000e+00> : vector<8x512xf32>
    %2 = tpu.matmul %0, %1, %cst {dimension_numbers = #tpu.dot_dimension_numbers<[1], [0], [0], [1], [0, 0, 1, 1], [], []>} : vector<8x36xbf16>, vector<36x512xbf16>, vector<8x512xf32> -> vector<8x512xf32>
    %c0_3 = arith.constant 0 : index
    %c0_4 = arith.constant 0 : index
    %3 = vector.load %arg3[%c0_3, %c0_4] : memref<8x512xf32, #tpu.memory_space<vmem>>, vector<8x512xf32>
    %4 = arith.addf %2, %3 : vector<8x512xf32>
    %c0_5 = arith.constant 0 : index
    %c0_6 = arith.constant 0 : index
    %5 = vector.load %arg4[%c0_5, %c0_6] : memref<8x512xf32, #tpu.memory_space<vmem>>, vector<8x512xf32>
    tpu.vector_store %arg4[%c0_5, %c0_6], %4 {strides = array<i32>} : memref<8x512xf32, #tpu.memory_space<vmem>>, vector<8x512xf32>,
    return
  }
  func.func @transform_0(%arg0: i32) -> (i32, i32) {
    %c0_i32 = arith.constant 0 : i32
    %c0_i32_0 = arith.constant 0 : i32
    %c0_i32_1 = arith.constant 0 : i32
    return %c0_i32, %c0_i32_0 : i32, i32
  }
  func.func @transform_1(%arg0: i32) -> (i32, i32) {
    %c0_i32 = arith.constant 0 : i32
    %c0_i32_0 = arith.constant 0 : i32
    %c0_i32_1 = arith.constant 0 : i32
    return %c0_i32, %c0_i32_0 : i32, i32
  }
  func.func @transform_2(%arg0: i32) -> (i32, i32) {
    %c0_i32 = arith.constant 0 : i32
    %c0_i32_0 = arith.constant 0 : i32
    %c0_i32_1 = arith.constant 0 : i32
    return %c0_i32, %c0_i32_0 : i32, i32
  }
  func.func @transform_3(%arg0: i32) -> (i32, i32) {
    %c0_i32 = arith.constant 0 : i32
    %c0_i32_0 = arith.constant 0 : i32
    %c0_i32_1 = arith.constant 0 : i32
    return %c0_i32, %c0_i32_0 : i32, i32
  }
}

</mosaic_0001>

<bundles_post_ra>
// kernel: _lambda_.1
= control target key start
LH: loop header
LB: loop body
LE: loop exit
PB: predicated region body
PF: predicated region fallthrough
CT: control target
= control target key end

     0   :  { %vm85_vm0 = vcmask 1041408   ;;  %s338_s0 = inlined_call_operand.vmem [shape: bf16[36,512], index: 0, kind: input, shape index: {}]   ;;  %s339_s1 = inlined_call_operand.vmem [shape: bf16[8,36], index: 1, kind: input, shape index: {}]   ;;  %s340_s2 = inlined_call_operand.vmem [shape: f32[8,512], index: 2, kind: input, shape index: {}]   ;;  %s341_s3 = inlined_call_operand.hbm [shape: f32[8,512], index: 3, kind: output, shape index: {}]  }
   0x1   :  { %v25_v0 = vld [vmem:[%s338_s0 + $0x40] sm:$0x33]  ;;  %v26_v1 = vld [vmem:[%s338_s0 + $0x48] sm:$0x33]  ;;  %v212_v7 = vld [vmem:[%s338_s0 + $0x2c] sm:$0xf0] }
   0x2   :  { %v57_v2 = vunpack.c.l.b16 %v25_v0  ;;  %v58_v3 = vunpack.c.h.b16 %v25_v0  ;;  %v59_v4 = vunpack.c.l.b16 %v26_v1  ;;  %v60_v5 = vunpack.c.h.b16 %v26_v1  ;;  %v188_v6 = vld [vmem:[%s338_s0 + $0x20] sm:$0xf]  ;;  %v210_v12 = vld [vmem:[%s338_s0 + $0x24] sm:$0xf]  ;;  %v190_v13 = vld [vmem:[%s338_s0 + $0x30] sm:$0xf0] }
   0x3   :  { %v196_v14 = vld [vmem:[%s338_s0 + $0x28] sm:$0xf]  ;;  %v213_v15 = vld [vmem:[%s338_s0 + $0x34] sm:$0xf0]  ;;  %v211_v16 = vld [vmem:[%s338_s0 + $0x2c] sm:$0xf]  ;;  %v189_v22 = vor.u32 %v212_v7, %v188_v6  ;;  %v193_v23 = vor.u32 %v210_v12, %v190_v13 }
   0x4   :  { %v69_v8 = vpack.c.b16 %v57_v2, %v57_v2  ;;  %v70_v9 = vpack.c.b16 %v58_v3, %v58_v3  ;;  %v71_v10 = vpack.c.b16 %v59_v4, %v59_v4  ;;  %v72_v11 = vpack.c.b16 %v60_v5, %v60_v5  ;;  %v198_v17 = vld [vmem:[%s338_s0 + $0x38] sm:$0xf0]  ;;  %v172_v24 = vld [vmem:[%s338_s0] sm:$0xf]  ;;  %v208_v25 = vld [vmem:[%s338_s0 + $0xc] sm:$0xf0] }
   0x5   :  { %v206_v26 = vld [vmem:[%s338_s0 + $0x4] sm:$0xf]  ;;  %v197_v27 = vor.u32 %v213_v15, %v196_v14  ;;  %v201_v28 = vor.u32 %v211_v16, %v198_v17  ;;  %v174_v29 = vld [vmem:[%s338_s0 + $0x10] sm:$0xf0]  ;;  %v180_v30 = vld [vmem:[%s338_s0 + $0x8] sm:$0xf] }
   0x6   :  { %v87_v18 = vsel %vm85_vm0, %v69_v8, 0  ;;  %v90_v19 = vsel %vm85_vm0, %v70_v9, 0  ;;  %v93_v20 = vsel %vm85_vm0, %v71_v10, 0  ;;  %v96_v21 = vsel %vm85_vm0, %v72_v11, 0 }
   0x7   :  { %103 = vmatpush.bf16.msra.mxu0 %v87_v18  ;;  %116 = vmatpush.bf16.msra.mxu1 %v90_v19 }
   0x8   :  { %129 = vmatpush.bf16.msra.mxu2 %v93_v20  ;;  %142 = vmatpush.bf16.msra.mxu3 %v96_v21 }
   0x9   :  { %8 = vsyncpa [#allocation3], 0  ;;  %v209_v31 = vld [vmem:[%s338_s0 + $0x14] sm:$0xf0]  ;;  %v207_v32 = vld [vmem:[%s338_s0 + $0xc] sm:$0xf]  ;;  %v173_v34 = vor.u32 %v208_v25, %v172_v24  ;;  %v177_v35 = vor.u32 %v206_v26, %v174_v29 }
   0xa   :  { %v182_v33 = vld [vmem:[%s338_s0 + $0x18] sm:$0xf0]  ;;  %v181_v36 = vor.u32 %v209_v31, %v180_v30  ;;  %v16_v38 = vld [vmem:[%s339_s1] sm:$0xf]  ;;  %vm81_vm1 = vcmask 293888   ;;  %v28_v40 = vld [vmem:[%s340_s2 + $0x8] sm:$0xff] }
   0xb   :  { %104 = vmatpush.bf16.msra.mxu0 %v189_v22  ;;  %117 = vmatpush.bf16.msra.mxu1 %v193_v23  ;;  %v185_v37 = vor.u32 %v207_v32, %v182_v33  ;;  %v27_v39 = vld [vmem:[%s340_s2] sm:$0xff]  ;;  %v29_v45 = vld [vmem:[%s340_s2 + $0x10] sm:$0xff]  ;;  %v30_v46 = vld [vmem:[%s340_s2 + $0x18] sm:$0xff]  ;;  %s241_s29 = smov [#allocation2]   ;;  %s161_s6 = sshll.u32 %s341_s3, 4  ;;  %s162_s6 = int_to_ptr.hbm [resolvable:$true] %s161_s6 }
   0xc   :  { %130 = vmatpush.bf16.msra.mxu2 %v197_v27  ;;  %143 = vmatpush.bf16.msra.mxu3 %v201_v28  ;;  %s159_s30 = sshll.u32 %s241_s29, 4  ;;  %s160_s30 = int_to_ptr.vmem [resolvable:$true] %s159_s30 }
   0xf   :  { %105 = vmatpush.bf16.msra.mxu0 %v173_v34  ;;  %118 = vmatpush.bf16.msra.mxu1 %v177_v35 }
  0x10   :  { %131 = vmatpush.bf16.msra.mxu2 %v181_v36  ;;  %144 = vmatpush.bf16.msra.mxu3 %v185_v37 }
  0x12   :  { %202 = vmatmul.msk.bf16.vlgmr.msra.gmra.mxu0 %vm81_vm1, %v16_v38  ;;  %203 = vmatmul.msk.bf16.vlgmr.msra.gmra.mxu1 %vm81_vm1, %v16_v38 }
  0x13   :  { %204 = vmatmul.msk.bf16.vlgmr.msra.gmra.mxu2 %vm81_vm1, %v16_v38  ;;  %205 = vmatmul.msk.bf16.vlgmr.msra.gmra.mxu3 %vm81_vm1, %v16_v38 }
  0x8f   :  { %v107_v41 = vpop.f32.mrf.mxu0  ;;  %v120_v42 = vpop.f32.mrf.mxu1 }
  0x90   :  { %v108_v43 = vadd.f32 %v107_v41, %v27_v39  ;;  %v121_v44 = vadd.f32 %v120_v42, %v28_v40 }
  0x92   :  { %150 = vst [vmem:[#allocation2] sm:$0xff] %v108_v43 }
  0x93   :  { %151 = vst [vmem:[#allocation2 + $0x8] sm:$0xff] %v121_v44 }
  0x96   :  { %v133_v47 = vpop.f32.mrf.mxu2  ;;  %v146_v48 = vpop.f32.mrf.mxu3 }
  0x97   :  { %v134_v49 = vadd.f32 %v133_v47, %v29_v45  ;;  %v147_v50 = vadd.f32 %v146_v48, %v30_v46  ;;  %v109_v51 = vpop.f32.mrf.mxu0  ;;  %v122_v52 = vpop.f32.mrf.mxu1 }
  0x99   :  { %152 = vst [vmem:[#allocation2 + $0x10] sm:$0xff] %v134_v49 }
  0x9a   :  { %153 = vst [vmem:[#allocation2 + $0x18] sm:$0xff] %v147_v50 }
  0x9b   :  { %164 = dma.vmem_to_hbm [thread:$0]  %s160_s30, 512, %s162_s6, [#allocation3]  }
  0x9e   :  { %v135_v53 = vpop.f32.mrf.mxu2  ;;  %v148_v54 = vpop.f32.mrf.mxu3 }
  0x9f   :  { %239 = dma.done.wait [#allocation3], 512  }
  0xa0   :  { %240 = vsyncadd [#allocation3], 4294966784 }
  0xa1   :  { %169 = vsyncpa [#allocation3], 1 }

</bundles_post_ra>
